<compile_context>
chip_gen: v6e
topology: v6e:2x2x1
jax: 0.10.0
libtpu: 0.0.40
codegen_flags: <defaults>
</compile_context>

<pallas_src>
import jax
import jax.numpy as jnp
import numpy as np
from jax.experimental import pallas as pl
from jax.experimental.pallas import tpu as pltpu


def _router_kernel(x_ref, b_ref, o_ref):
    # x_ref: (TB, TF) tile of the flattened inputs
    # b_ref: (1, TF)  matching tile of the flattened (pre-broadcast) bias
    # o_ref: (TB, TF)
    # Router.forward with Identity activation: out = inputs + bias.
    # TODO(synk): a non-Identity `activation` module would be applied
    # elementwise here before the store.
    o_ref[...] = x_ref[...] + b_ref[...]


def _choose_tiles(B, F, itemsize, max_block_bytes=2 << 20):
    """Pick (TB, TF) block dims: lane-aligned, divisor tiles, ~2 MiB budget."""
    # Lane tile: a multiple of 128 that divides F; otherwise take the full axis
    # (full-extent blocks are always legal).
    if F % 128 == 0:
        tf_cands = [t for t in range(128, F + 1, 128) if F % t == 0]
    else:
        tf_cands = [F]
    # Batch (sublane) tile: a divisor of B that is a multiple of 8, or B itself,
    # so every block's second-minor dim is either 8-aligned or full-extent.
    tb_cands = [t for t in range(1, B + 1) if B % t == 0 and (t % 8 == 0 or t == B)]

    best = (min(tb_cands), min(tf_cands))
    best_bytes = -1
    for tb in tb_cands:
        for tf in tf_cands:
            blk = tb * tf * itemsize
            if blk <= max_block_bytes and blk > best_bytes:
                best, best_bytes = (tb, tf), blk
    tb, tf = best

    # v7x has two TensorCores sharing HBM: if everything landed in a single
    # grid step but the lane axis can still be split into >=2 aligned tiles,
    # halve TF once so the "parallel" axes shard across both cores.
    if (B // tb) * (F // tf) < 2:
        smaller = [t for t in tf_cands if t < tf]
        if smaller:
            tf = max(smaller)
    return tb, tf


def router_forward(inputs: jax.Array, bias: jax.Array) -> jax.Array:
    """Pallas TPU implementation of Router.forward (Identity activation).

    inputs: (B, in_capsules, out_capsules, num_features) = (B, I, J, D)
    bias:   (I, J, 1)   -- PyTorch parameter shape
    returns: same shape as inputs, equal to inputs + bias (broadcast over B, D).
    """
    B, I, J, D = inputs.shape
    F = I * J * D

    # Lane-dense layout: flatten the per-batch (I, J, D) slab to one trailing
    # axis so the output last dim is a large multiple of 128 (512 here).
    x2 = inputs.reshape(B, F)
    # Pre-broadcast the tiny (I, J, 1) bias over D once outside the kernel
    # (only I*J*D floats, a few KiB) so the kernel is a pure lane-aligned add.
    b2 = jnp.broadcast_to(bias, (I, J, D)).reshape(1, F).astype(inputs.dtype)

    tb, tf = _choose_tiles(B, F, inputs.dtype.itemsize)
    grid = (B // tb, F // tf)

    out2 = pl.pallas_call(
        _router_kernel,
        out_shape=jax.ShapeDtypeStruct((B, F), inputs.dtype),
        grid_spec=pltpu.PrefetchScalarGridSpec(
            num_scalar_prefetch=0,
            grid=grid,
            in_specs=[
                pl.BlockSpec((tb, tf), lambda i, j: (i, j)),   # inputs tile
                pl.BlockSpec((1, tf), lambda i, j: (0, j)),    # bias tile (shared)
            ],
            out_specs=pl.BlockSpec((tb, tf), lambda i, j: (i, j)),
        ),
        compiler_params=pltpu.CompilerParams(
            # Independent tiles on both axes -> megacore sharding on v7x.
            dimension_semantics=("parallel", "parallel"),
            # Explicit scoped-VMEM cap: above v5e's 16 MiB default, below v7x's
            # 64 MiB physical; blocks are ~2 MiB so double-buffered in + out
            # plus the bias stays well under this limit everywhere.
            vmem_limit_bytes=32 * 1024 * 1024,
        ),
    )(x2, b2)

    return out2.reshape(B, I, J, D)


if __name__ == "__main__":
    # Small shapes consistent with the module:
    # batch=2, in_capsules=8, out_capsules=4, num_features=16.
    B, I, J, D = 2, 8, 4, 16

    key = jax.random.PRNGKey(0)
    kx, kb = jax.random.split(key)
    x = jax.random.normal(kx, (B, I, J, D), dtype=jnp.float32)
    # Router.reset_parameters() zeroes the bias; use a deterministic non-zero
    # bias here so the broadcast path is actually exercised by the check.
    bias = 0.1 * jax.random.normal(kb, (I, J, 1), dtype=jnp.float32)

    out = jax.block_until_ready(router_forward(x, bias))

    # Pure-JAX reference matching the PyTorch forward exactly (Identity act.).
    ref = x + bias[None]
    np.testing.assert_allclose(np.asarray(out), np.asarray(ref), rtol=1e-6, atol=1e-6)
    assert out.shape == x.shape

    print("KERNEL_OK")
</pallas_src>

<mosaic_0001>
module attributes {stable_mosaic.version = 11 : i64} {
  func.func @_router_kernel(%arg0: i32, %arg1: i32, %arg2: memref<2x256xf32, #tpu.memory_space<vmem>>, %arg3: memref<1x256xf32, #tpu.memory_space<vmem>>, %arg4: memref<2x256xf32, #tpu.memory_space<vmem>>) attributes {dimension_semantics = [#tpu.dimension_semantics<parallel>, #tpu.dimension_semantics<parallel>], iteration_bounds = array<i64: 1, 2>, scalar_prefetch = 0 : i64, scratch_operands = 0 : i64, tpu.core_type = #tpu.core_type<tc>, window_params = [{transform_indices = @transform_0, window_bounds = array<i64: 2, 256>}, {transform_indices = @transform_1, window_bounds = array<i64: 1, 256>}, {transform_indices = @transform_2, window_bounds = array<i64: 2, 256>}]} {
    %c0 = arith.constant 0 : index
    %c0_0 = arith.constant 0 : index
    %0 = vector.load %arg2[%c0, %c0_0] : memref<2x256xf32, #tpu.memory_space<vmem>>, vector<2x256xf32>
    %c0_1 = arith.constant 0 : index
    %c0_2 = arith.constant 0 : index
    %1 = vector.load %arg3[%c0_1, %c0_2] : memref<1x256xf32, #tpu.memory_space<vmem>>, vector<1x256xf32>
    %2 = vector.broadcast %1 : vector<1x256xf32> to vector<2x256xf32>
    %3 = arith.addf %0, %2 : vector<2x256xf32>
    %c0_3 = arith.constant 0 : index
    %c0_4 = arith.constant 0 : index
    %4 = vector.load %arg4[%c0_3, %c0_4] : memref<2x256xf32, #tpu.memory_space<vmem>>, vector<2x256xf32>
    tpu.vector_store %arg4[%c0_3, %c0_4], %3 {strides = array<i32>} : memref<2x256xf32, #tpu.memory_space<vmem>>, vector<2x256xf32>,
    return
  }
  func.func @transform_0(%arg0: i32, %arg1: i32) -> (i32, i32) {
    %c0_i32 = arith.constant 0 : i32
    return %arg0, %arg1 : i32, i32
  }
  func.func @transform_1(%arg0: i32, %arg1: i32) -> (i32, i32) {
    %c0_i32 = arith.constant 0 : i32
    %c0_i32_0 = arith.constant 0 : i32
    return %c0_i32, %arg1 : i32, i32
  }
  func.func @transform_2(%arg0: i32, %arg1: i32) -> (i32, i32) {
    %c0_i32 = arith.constant 0 : i32
    return %arg0, %arg1 : i32, i32
  }
}

</mosaic_0001>

<bundles_post_ra>
// kernel: tpu_custom_call.1
= control target key start
LH: loop header
LB: loop body
LE: loop exit
PB: predicated region body
PF: predicated region fallthrough
CT: control target
= control target key end

     0   :  { %7 = vsyncpa [#allocation3], 0  ;;  %s780_s0 = inlined_call_operand.hbm [shape: f32[2,512], index: 0, kind: input, shape index: {}]   ;;  %s781_s1 = inlined_call_operand.hbm [shape: f32[1,512], index: 1, kind: input, shape index: {}]   ;;  %s782_s2 = inlined_call_operand.hbm [shape: f32[2,512], index: 2, kind: output, shape index: {}]  }
   0x1   :  { %9 = vsyncpa [#allocation3 + $0x1], 0 }
   0x2   :  { %10 = vsyncpa [#allocation6], 0 }
   0x3   :  { %12 = vsyncpa [#allocation6 + $0x1], 0 }
   0x4   :  { %13 = vsyncpa [#allocation4], 0 }
   0x5   :  { %15 = vsyncpa [#allocation4 + $0x1], 0  ;;  %s616_s9 = smov 0   ;;  %s618_s10 = smov 0  }
   0x6   :  { %s620_s11 = smov 0   ;;  %s622_s12 = smov 0  }
   0x7   :  { %s624_s13 = smov 0   ;;  %s626_s14 = smov 0  }
   0x8 LB: > { %s365_s15 = sadd.s32 4294967295, %s595_s14   ;;  %s366_s16 = sadd.s32 4294967294, %s595_s14   ;;  %s595_s14 = sphi %s626_s14, %s21_s14   ;;  %s591_s13 = sphi %s624_s13, %s794_s13   ;;  %s587_s12 = sphi %s622_s12, %s793_s12   ;;  %s583_s11 = sphi %s620_s11, %s792_s11   ;;  %s579_s10 = sphi %s618_s10, %s791_s10   ;;  %s575_s9 = sphi %s616_s9, %s790_s9  }
   0x9   : > { %s30_s17 = sadd.s32 1, %s591_s13  ;;  %s42_s18 = sadd.s32 1, %s583_s11 }
   0xa   : > { %p31_p0 = scmp.ge.s32.totalorder %s30_s17, 2  ;;  %p49_p1 = scmp.ne.s32.totalorder %s583_s11, %s579_s10 }
   0xb   : > { %p50_p2 = scmp.eq.s32.totalorder %s595_s14, 0  ;;  %p55_p3 = scmp.ne.s32.totalorder %s579_s10, %s575_s9 }
   0xc   : > { %s796_s17 = smov (%p31_p0, %s30_s17), 0  ;;  %p56_p5 = scmp.eq.s32.totalorder %s365_s15, 0 }
   0xd   : > { %p657_p4 = por %p50_p2, %p49_p1  ;;  %s38_s20 = ssub.s32 %s591_s13, %s796_s17 }
   0xe   : > { %p107_p6 = scmp.eq.s32.totalorder %s365_s15, 1  ;;  %p40_p7 = scmp.eq.s32.totalorder %s38_s20, 0 }
   0xf   : > { %p663_p8 = por %p56_p5, %p55_p3  ;;  %p113_p10 = scmp.eq.s32.totalorder %s366_s16, 1 }
  0x10   : > { %p667_p9 = por %p107_p6, %p49_p1  ;;  %p404_p13 = scmp.lt.s32.totalorder %s595_s14, 2 }
  0x11   : > { %s672_s23 = scalar_select %p40_p7, %s583_s11, %s42_s18  }
  0x12   : > { %p674_p11 = por %p113_p10, %p55_p3  ;;  %s681_s25 = sand.u32 1, %s583_s11  }
  0x13   : > { %s369_s26 = sshll.u32 %s681_s25, 2  ;;  %s384_s27 = sshll.u32 %s591_s13, 6 }
  0x14   : > { %s145_s30 = scalar_lea.hbm %s780_s0, %s384_s27  ;;  %s137_s3 = scalar_lea.vmem [#allocation2], %s369_s26 }
  0x15   : > { %s147_s4 = sshll.u32 %s137_s3, 4  ;;  %p690_p0 = pnand %p404_p13, %p657_p4  ;;  %s148_s4 = int_to_ptr.vmem [resolvable:$true] %s147_s4 }
  0x16   : > { %p375_p1 = scmp.ge.s32.totalorder %s595_s14, 1  ;;  %p171_p2 = scmp.lt.s32.totalorder %s595_s14, 3 }
  0x17   : > { %s134_s6 = scalar_lea.sflag [#allocation3], %s681_s25  ;;  %p457_p3 = pneg %p690_p0 }
  0x18   : > { %s468_s7 = scalar_lea.vmem %s148_s4, 64  ;;  %s597_s8 = smov [#allocation2]  }
  0x19   : > { %p469_p5 = scmp.ne.s32.totalorder %s148_s4, %s468_s7  ;;  %s473_s15 = sshll.u32 %s597_s8, 4  ;;  %s474_s15 = int_to_ptr.vmem [resolvable:$false] %s473_s15 }
  0x1a   : > { %s475_s16 = scalar_lea.vmem %s474_s15, 128  ;;  %p476_p4 = scmp.lt.s32.totalorder %s148_s4, %s474_s15 }
  0x1b   : > { %p471_p6 = pnand %p469_p5, %p457_p3  ;;  %p477_p10 = scmp.lt.s32.totalorder %s475_s16, %s468_s7 }
  0x1d   : > { %p472_p7 = pneg %p471_p6  ;;  %p478_p13 = por %p477_p10, %p476_p4 }
  0x1f   : > { %p479_p12 = pnand %p478_p13, %p472_p7 }
  0x21   : > { %482 = shalt.err (!%p479_p12)
}
  0x22   : > { %396 = dma.hbm_to_vmem [thread:$0]  (!%p690_p0), %s145_s30, 64, %s148_s4, %s134_s6  }
  0x23   : > { %p708_p5 = pnand %p375_p1, %p171_p2  ;;  %s372_s19 = sshll.u32 %s681_s25, 1 }
  0x24   : > { %s385_s20 = sshll.u32 %s591_s13, 5  ;;  %s158_s29 = scalar_lea.vmem [#allocation5], %s372_s19 }
  0x25   : > { %s164_s28 = scalar_lea.hbm %s781_s1, %s385_s20  ;;  %s166_s3 = sshll.u32 %s158_s29, 4  ;;  %s167_s3 = int_to_ptr.vmem [resolvable:$true] %s166_s3 }
  0x26   : > { %s155_s7 = scalar_lea.sflag [#allocation6], %s681_s25  ;;  %s496_s8 = scalar_lea.vmem %s167_s3, 32 }
  0x27   : > { %p497_p12 = scmp.ne.s32.totalorder %s167_s3, %s496_s8  ;;  %s598_s30 = smov [#allocation5]  }
  0x28   : > { %s501_s4 = sshll.u32 %s598_s30, 4  ;;  %s502_s4 = int_to_ptr.vmem [resolvable:$false] %s501_s4 }
  0x29   : > { %p499_p6 = pnand %p497_p12, %p457_p3  ;;  %s503_s6 = scalar_lea.vmem %s502_s4, 64 }
  0x2a   : > { %p504_p1 = scmp.lt.s32.totalorder %s167_s3, %s502_s4  ;;  %p505_p2 = scmp.lt.s32.totalorder %s503_s6, %s496_s8 }
  0x2b   : > { %p500_p7 = pneg %p499_p6 }
  0x2c   : > { %p506_p4 = por %p505_p2, %p504_p1 }
  0x2e   : > { %p507_p10 = pnand %p506_p4, %p500_p7 }
  0x30   : > { %510 = shalt.err (!%p507_p10)
}
  0x31   : > { %399 = dma.hbm_to_vmem [thread:$0]  (!%p690_p0), %s164_s28, 32, %s167_s3, %s155_s7  }
  0x32   : > { %175 = sbr.rel (%p708_p5) target bundleno = 86 (0x56), region = 28  ;;  %s726_s25 = sand.u32 (!%p708_p5), 1, %s579_s10  }
  0x33   : > { %s376_s15 = sshll.u32 (!%p708_p5), %s726_s25, 2  ;;  %s178_s16 = scalar_lea.sflag (!%p708_p5), [#allocation3], %s726_s25 }
  0x34   : > { %s181_s19 = scalar_lea.vmem (!%p708_p5), [#allocation2], %s376_s15 }
  0x37   : > { %562 = dma.done.wait (%p663_p8), %s178_s16, 64  }
  0x38   : > { %564 = vsyncadd (%p663_p8), %s178_s16, 4294967232  ;;  %s377_s5 = sshll.u32 %s726_s25, 1  ;;  %s187_s18 = scalar_lea.sflag [#allocation6], %s726_s25 }
  0x39   : > { %s190_s20 = scalar_lea.vmem [#allocation5], %s377_s5 }
  0x3a   : > { %566 = dma.done.wait (%p663_p8), %s187_s18, 32  }
  0x3b   : > { %568 = vsyncadd (%p663_p8), %s187_s18, 4294967264  ;;  %v222_v0 = vlaneseq  ;;  %v599_v1 = vmov 1983009808   ;;  %v220_v7 = vld [vmem:[%s190_s20] sm:$0x3]  ;;  %s215_s26 = scalar_lea.vmem [#allocation7], %s376_s15 }
  0x3c   : > { %v232_v2 = vunpack.c.l.s4 %v599_v1  ;;  %v219_v12 = vld [vmem:[%s181_s19] sm:$0xf]  ;;  %s258_s27 = sshll.u32 %s215_s26, 4  ;;  %s386_s21 = sshll.u32 %s587_s12, 6  ;;  %s259_s27 = int_to_ptr.vmem [resolvable:$true] %s258_s27 }
  0x3d   : > { %v223_v3 = vshrl.u32 %v222_v0, 7  ;;  %s256_s3 = scalar_lea.hbm %s782_s2, %s386_s21  ;;  %s242_s7 = scalar_lea.sflag [#allocation4], %s726_s25 }
  0x3e   : > { %v233_v6 = vunpack.c.0.s8 %v232_v2  ;;  %s511_s8 = scalar_lea.vmem %s259_s27, 64  ;;  %s600_s30 = smov [#allocation7]  }
  0x3f   : > { %v224_v4 = vsub.s32 0, %v223_v3  ;;  %v228_v5 = vsub.s32 1, %v223_v3  ;;  %p512_p8 = scmp.ne.s32.totalorder %s259_s27, %s511_s8  ;;  %s515_s4 = sshll.u32 %s600_s30, 4  ;;  %s516_s4 = int_to_ptr.vmem [resolvable:$false] %s515_s4 }
  0x40   : > { %v236_v10 = vsub.s32 %v233_v6, %v223_v3  ;;  %s517_s6 = scalar_lea.vmem %s516_s4, 128  ;;  %p518_p13 = scmp.lt.s32.totalorder %s259_s27, %s516_s4 }
  0x41   : > { %v225_v8 = vrot.slane %v220_v7, %v224_v4  ;;  %v229_v9 = vrot.slane %v220_v7, %v228_v5  ;;  %p513_p0 = pnand %p512_p8, %p667_p9  ;;  %p519_p5 = scmp.lt.s32.totalorder %s517_s6, %s511_s8 }
  0x43   : > { %v230_v11 = vcombine.low %v225_v8, %v229_v9  ;;  %p514_p3 = pneg %p513_p0  ;;  %p520_p12 = por %p519_p5, %p518_p13 }
  0x45   : > { %v237_v13 = vrot.slane %v230_v11, %v236_v10  ;;  %p521_p6 = pnand %p520_p12, %p514_p3 }
  0x47   : > { %v239_v14 = vadd.f32 %v237_v13, %v219_v12 }
  0x49   : > { %240 = vst [vmem:[%s215_s26] sm:$0xf] %v239_v14 }
  0x4a   : > { %524 = shalt.err (!%p521_p6)
}
  0x4b   : > { %s525_s12 = scalar_lea.hbm %s256_s3, 64  ;;  %s529_s16 = scalar_lea.hbm %s782_s2, 128 }
  0x4c   : > { %p526_p7 = scmp.ne.s32.totalorder %s256_s3, %s525_s12  ;;  %p530_p4 = scmp.lt.s32.totalorder %s256_s3, %s782_s2 }
  0x4d   : > { %p531_p10 = scmp.lt.s32.totalorder %s529_s16, %s525_s12 }
  0x4e   : > { %p527_p1 = pnand %p526_p7, %p667_p9 }
  0x4f   : > { %p532_p8 = por %p531_p10, %p530_p4 }
  0x50   : > { %p528_p2 = pneg %p527_p1 }
  0x52   : > { %p533_p0 = pnand %p532_p8, %p528_p2 }
  0x54   : > { %536 = shalt.err (!%p533_p0)
}
  0x55   : > { %391 = dma.vmem_to_hbm [thread:$0]  (%p667_p9), %s259_s27, 64, %s256_s3, %s242_s7  }
  0x56 PF: > { %s270_s18 = sand.u32 1, %s575_s9   ;;  %p789_p3 = scmp.ge.s32.totalorder %s595_s14, 2 }
  0x57   : > { %s271_s20 = scalar_lea.sflag [#allocation4], %s270_s18 }
  0x58   : > { %p401_p13 = pnand %p789_p3, %p674_p11 }
  0x5a   : > { %p402_p5 = pneg %p401_p13 }
  0x5c   : > { %570 = dma.done.wait (%p402_p5), %s271_s20, 64  }
  0x5d   : > { %572 = vsyncadd (%p402_p5), %s271_s20, 4294967232  ;;  %s21_s14 = sadd.s32 1, %s595_s14   ;;  %s790_s9 = smov %s579_s10 }
  0x5e   : > { %p18_p12 = scmp.ge.s32.totalorder %s21_s14, 4   ;;  %s791_s10 = smov %s583_s11 }
  0x5f   : > { %s792_s11 = smov %s672_s23  ;;  %s793_s12 = smov %s591_s13 }
  0x60   : > { %s794_s13 = smov %s796_s17  ;;  %20 = sbr.rel (!%p18_p12) target bundleno = 8 (0x8), region = 86 }
  0x65   :  { %276 = vsyncpa [#allocation3], 1 }
  0x66   :  { %278 = vsyncpa [#allocation3 + $0x1], 1 }
  0x67   :  { %279 = vsyncpa [#allocation6], 1 }
  0x68   :  { %281 = vsyncpa [#allocation6 + $0x1], 1 }
  0x69   :  { %282 = vsyncpa [#allocation4], 1 }
  0x6a   :  { %284 = vsyncpa [#allocation4 + $0x1], 1 }

</bundles_post_ra>
